<compile_context>
chip_gen: v5e
topology: v5e:2x2
jax: 0.10.0
libtpu: 0.0.40
codegen_flags: <defaults>
</compile_context>

<pallas_src>
import jax
import jax.numpy as jnp
from jax import lax
from jax.experimental import pallas as pl
from jax.experimental.pallas import tpu as pltpu


def block_ic_kernel(x_ref, dw_ref, b1_ref, pw_ref, b2_ref, o_ref):
    """One grid step = B_blk lane-groups (each lane-group = P images packed on lanes).

    x_ref : (9, M, L)     9 pre-shifted depthwise windows (aligned loads only)
    dw_ref: (9, M, L)     BN1-scaled depthwise taps, pre-tiled/broadcast
    b1_ref: (M, L)        BN1 shift pushed through the depthwise conv (per-pixel bias)
    pw_ref: (L, L_out)    block-diagonal pointwise weights * BN2 scale (MXU dtype)
    b2_ref: (1, L_out)    BN2 shift pushed through the pointwise conv
    o_ref : (M, L_out)    lane-dense output rows
    """
    # Depthwise 3x3 conv: 9 aligned loads + VPU FMAs, all f32 (v5e-safe).
    acc = x_ref[0] * dw_ref[0]
    for k in range(1, 9):
        acc = acc + x_ref[k] * dw_ref[k]
    out1 = jnp.maximum(acc + b1_ref[...], 0.0)                        # relu   (M, L)

    # Pointwise 1x1 conv (BN2 folded) as a single MXU matmul; f32 accumulation.
    z = jnp.dot(out1.astype(pw_ref.dtype), pw_ref[...],
                preferred_element_type=jnp.float32)                   # (M, L_out)
    o_ref[...] = jnp.maximum(z + b2_ref[...], 0.0)                    # relu, unmasked store


def block_ic_forward(x_nchw, bn1, dw_w, bn2, pw_w, eps=1e-5, mxu_dtype=jnp.bfloat16):
    """Wrapper: NCHW in, NCHW out (matches PyTorch Block_IC forward, stride=1, eval mode)."""
    N, C, H, W = x_nchw.shape
    Cout = pw_w.shape[0]
    f32 = jnp.float32

    # ---- choose lane-packing (P images per lane-group) and batch tile (B_blk groups/step) ----
    P = 2 if N >= 4 else 1                        # fill 128 lanes when the batch allows
    NP = -(-N // P)                               # lane-groups needed (ceil)
    B_blk = max(1, min(8, NP // 2)) if NP >= 2 else 1   # >=2 grid steps (v7x), M<=128
    G = -(-NP // B_blk)                           # grid steps
    NB = G * B_blk                                # lane-groups incl. padding
    N_tot = NB * P                                # images incl. padding
    L, L_out = P * W * C, P * W * Cout
    M = B_blk * H                                 # matmul rows per grid step

    # ---- fold BN running stats + affine params into per-channel scale/shift ----
    g1, be1, m1, v1 = bn1
    s1 = (g1 / jnp.sqrt(v1 + eps)).astype(f32)
    sh1 = (be1 - m1 * s1).astype(f32)
    g2, be2, m2, v2 = bn2
    s2 = (g2 / jnp.sqrt(v2 + eps)).astype(f32)
    sh2 = (be2 - m2 * s2).astype(f32)

    # ---- input: NCHW -> NHWC, pad batch to N_tot, zero-pad H/W, pre-shift the 9 windows,
    #      lane-pack P images -> (9, NB*H, L) ----
    x = jnp.transpose(x_nchw, (0, 2, 3, 1)).astype(f32)               # (N, H, W, C)
    if N_tot > N:
        x = jnp.concatenate([x, jnp.zeros((N_tot - N, H, W, C), f32)], axis=0)
    xpad = jnp.pad(x, ((0, 0), (1, 1), (1, 1), (0, 0)))               # (N_tot, H+2, W+2, C)
    wins = jnp.stack([xpad[:, kh:kh + H, kw:kw + W, :]
                      for kh in range(3) for kw in range(3)], axis=1)  # (N_tot, 9, H, W, C)
    x_in = (wins.reshape(NB, P, 9, H, W, C)
                .transpose(2, 0, 3, 1, 4, 5)                           # (9, NB, H, P, W, C)
                .reshape(9, NB * H, L))

    # ---- depthwise taps: fold BN1 scale, tile along (P, W) lanes, pre-broadcast over rows ----
    dw = jnp.transpose(dw_w[:, 0, :, :], (1, 2, 0)).astype(f32)        # (3, 3, C)
    dw_s = (dw * s1[None, None, :]).reshape(9, C)
    dw_row = jnp.tile(dw_s, (1, P * W))                                # (9, L)
    dw_bc = jnp.broadcast_to(dw_row[:, None, :], (9, M, L))            # (9, M, L)

    # ---- BN1 shift pushed through the depthwise conv (exact incl. zero-padded border) ----
    b1_in = jnp.broadcast_to(sh1.reshape(1, C, 1, 1), (1, C, H, W)).astype(f32)
    b1_map = lax.conv_general_dilated(
        b1_in, dw_w.astype(f32), window_strides=(1, 1),
        padding=((1, 1), (1, 1)), feature_group_count=C,
        dimension_numbers=('NCHW', 'OIHW', 'NCHW'))                    # (1, C, H, W)
    b1_hwc = jnp.transpose(b1_map[0], (1, 2, 0)).reshape(H, W * C)     # (H, W*C)
    b1_rows = jnp.tile(b1_hwc, (B_blk, P))                             # (M, L)

    # ---- pointwise weights: fold BN2 scale, block-diagonal over (P, W) lanes ----
    pw = jnp.transpose(pw_w[:, :, 0, 0], (1, 0)).astype(f32)           # (C, Cout)
    pw_s = s2[:, None] * pw
    pw_big = jnp.kron(jnp.eye(P * W, dtype=f32), pw_s).astype(mxu_dtype)   # (L, L_out)
    b2_row = jnp.tile(sh2 @ pw, P * W).reshape(1, L_out).astype(f32)   # (1, L_out)

    out_rows = pl.pallas_call(
        block_ic_kernel,
        out_shape=jax.ShapeDtypeStruct((NB * H, L_out), f32),
        grid_spec=pltpu.PrefetchScalarGridSpec(
            num_scalar_prefetch=0,
            grid=(G,),
            in_specs=[
                pl.BlockSpec((9, M, L), lambda n: (0, n, 0)),
                pl.BlockSpec((9, M, L), lambda n: (0, 0, 0)),   # grid-invariant: fetched once
                pl.BlockSpec((M, L), lambda n: (0, 0)),
                pl.BlockSpec((L, L_out), lambda n: (0, 0)),
                pl.BlockSpec((1, L_out), lambda n: (0, 0)),
            ],
            out_specs=pl.BlockSpec((M, L_out), lambda n: (n, 0)),
        ),
        compiler_params=pltpu.CompilerParams(
            dimension_semantics=("parallel",)),
    )(x_in, dw_bc, b1_rows, pw_big, b2_row)

    # (NB*H, L_out) -> (N, Cout, H, W)   (lane order is (p, w, cout); rows are (group, h))
    out = (out_rows.reshape(NB, H, P, W, Cout)
                   .transpose(0, 2, 4, 1, 3)                           # (NB, P, Cout, H, W)
                   .reshape(NB * P, Cout, H, W))
    return out[:N]


def block_ic_reference(x_nchw, bn1, dw_w, bn2, pw_w, eps=1e-5):
    """Pure-JAX reference (NCHW, same semantics) for correctness checking."""
    g1, be1, m1, v1 = bn1
    g2, be2, m2, v2 = bn2
    C = x_nchw.shape[1]

    def bn(x, g, b, m, v):
        return (x - m[None, :, None, None]) / jnp.sqrt(
            v[None, :, None, None] + eps) * g[None, :, None, None] + b[None, :, None, None]

    xbn = bn(x_nchw, g1, be1, m1, v1)
    out1 = lax.conv_general_dilated(
        xbn, dw_w, window_strides=(1, 1), padding=((1, 1), (1, 1)),
        feature_group_count=C,
        dimension_numbers=('NCHW', 'OIHW', 'NCHW'))
    out1 = jnp.maximum(out1, 0.0)
    ybn = bn(out1, g2, be2, m2, v2)
    out2 = lax.conv_general_dilated(
        ybn, pw_w, window_strides=(1, 1), padding='VALID',
        dimension_numbers=('NCHW', 'OIHW', 'NCHW'))
    return jnp.maximum(out2, 0.0)


if __name__ == "__main__":
    def make_inputs(key, N, C, H, W, Cout):
        ks = jax.random.split(key, 11)
        x = jax.random.normal(ks[0], (N, C, H, W), jnp.float32)
        bn1 = (jax.random.normal(ks[1], (C,)) * 0.1 + 1.0,
               jax.random.normal(ks[2], (C,)) * 0.1,
               jax.random.normal(ks[3], (C,)) * 0.1,
               jax.random.uniform(ks[4], (C,), minval=0.5, maxval=1.5))
        dw_w = jax.random.normal(ks[5], (C, 1, 3, 3), jnp.float32) * 0.2
        bn2 = (jax.random.normal(ks[6], (C,)) * 0.1 + 1.0,
               jax.random.normal(ks[7], (C,)) * 0.1,
               jax.random.normal(ks[8], (C,)) * 0.1,
               jax.random.uniform(ks[9], (C,), minval=0.5, maxval=1.5))
        pw_w = jax.random.normal(ks[10], (Cout, C, 1, 1), jnp.float32) * 0.2
        return x, bn1, dw_w, bn2, pw_w

    C, H, W, Cout = 4, 16, 16, 8   # in_planes=4, out_planes=8

    # --- primary config: N=2 (grid=(2,), no lane-packing) ---
    N = 2
    x, bn1, dw_w, bn2, pw_w = make_inputs(jax.random.PRNGKey(0), N, C, H, W, Cout)
    ref = jax.block_until_ready(block_ic_reference(x, bn1, dw_w, bn2, pw_w))

    # f32-MXU path: tight check of the layout / BN-folding logic.
    out_f32 = jax.block_until_ready(
        block_ic_forward(x, bn1, dw_w, bn2, pw_w, mxu_dtype=jnp.float32))
    assert out_f32.shape == (N, Cout, H, W), out_f32.shape
    assert jnp.allclose(out_f32, ref, rtol=1e-4, atol=1e-4), \
        f"f32 max abs err {jnp.max(jnp.abs(out_f32 - ref))}"

    # default bf16-MXU path (f32 accumulation): looser tolerance per review guidance.
    out_bf = jax.block_until_ready(block_ic_forward(x, bn1, dw_w, bn2, pw_w))
    assert out_bf.shape == (N, Cout, H, W), out_bf.shape
    assert jnp.allclose(out_bf, ref, rtol=2e-2, atol=2e-2), \
        f"bf16 max abs err {jnp.max(jnp.abs(out_bf - ref))}"

    # --- larger batch: exercises lane-packing (P=2) + batch-tiling (B_blk=2, grid=(2,)) ---
    N2 = 8
    x2, bn1b, dw_wb, bn2b, pw_wb = make_inputs(jax.random.PRNGKey(1), N2, C, H, W, Cout)
    ref2 = jax.block_until_ready(block_ic_reference(x2, bn1b, dw_wb, bn2b, pw_wb))
    out2 = jax.block_until_ready(block_ic_forward(x2, bn1b, dw_wb, bn2b, pw_wb))
    assert out2.shape == (N2, Cout, H, W), out2.shape
    assert jnp.allclose(out2, ref2, rtol=2e-2, atol=2e-2), \
        f"N=8 max abs err {jnp.max(jnp.abs(out2 - ref2))}"

    # --- odd batch: exercises the batch zero-padding path (f32 MXU for a tight check) ---
    N3 = 5
    x3, bn1c, dw_wc, bn2c, pw_wc = make_inputs(jax.random.PRNGKey(2), N3, C, H, W, Cout)
    ref3 = jax.block_until_ready(block_ic_reference(x3, bn1c, dw_wc, bn2c, pw_wc))
    out3 = jax.block_until_ready(
        block_ic_forward(x3, bn1c, dw_wc, bn2c, pw_wc, mxu_dtype=jnp.float32))
    assert out3.shape == (N3, Cout, H, W), out3.shape
    assert jnp.allclose(out3, ref3, rtol=1e-4, atol=1e-4), \
        f"N=5 max abs err {jnp.max(jnp.abs(out3 - ref3))}"

    print("KERNEL_OK")
</pallas_src>

<mosaic_0001>
module attributes {stable_mosaic.version = 11 : i64} {
  func.func @block_ic_kernel(%arg0: i32, %arg1: memref<9x16x64xf32, #tpu.memory_space<vmem>>, %arg2: memref<9x16x64xf32, #tpu.memory_space<vmem>>, %arg3: memref<16x64xf32, #tpu.memory_space<vmem>>, %arg4: memref<64x128xf32, #tpu.memory_space<vmem>>, %arg5: memref<1x128xf32, #tpu.memory_space<vmem>>, %arg6: memref<16x128xf32, #tpu.memory_space<vmem>>) attributes {dimension_semantics = [#tpu.dimension_semantics<parallel>], iteration_bounds = array<i64: 2>, scalar_prefetch = 0 : i64, scratch_operands = 0 : i64, tpu.core_type = #tpu.core_type<tc>, window_params = [{transform_indices = @transform_0, window_bounds = array<i64: 9, 16, 64>}, {pipeline_mode = #tpu.pipeline_mode<synchronous>, transform_indices = @transform_1, window_bounds = array<i64: 9, 16, 64>}, {pipeline_mode = #tpu.pipeline_mode<synchronous>, transform_indices = @transform_2, window_bounds = array<i64: 16, 64>}, {pipeline_mode = #tpu.pipeline_mode<synchronous>, transform_indices = @transform_3, window_bounds = array<i64: 64, 128>}, {pipeline_mode = #tpu.pipeline_mode<synchronous>, transform_indices = @transform_4, window_bounds = array<i64: 1, 128>}, {transform_indices = @transform_5, window_bounds = array<i64: 16, 128>}]} {
    %c0 = arith.constant 0 : index
    %c0_0 = arith.constant 0 : index
    %c0_1 = arith.constant 0 : index
    %0 = vector.load %arg1[%c0, %c0_0, %c0_1] : memref<9x16x64xf32, #tpu.memory_space<vmem>>, vector<1x16x64xf32>
    %1 = vector.shape_cast %0 : vector<1x16x64xf32> to vector<16x64xf32>
    %c0_2 = arith.constant 0 : index
    %c0_3 = arith.constant 0 : index
    %c0_4 = arith.constant 0 : index
    %2 = vector.load %arg2[%c0_2, %c0_3, %c0_4] : memref<9x16x64xf32, #tpu.memory_space<vmem>>, vector<1x16x64xf32>
    %3 = vector.shape_cast %2 : vector<1x16x64xf32> to vector<16x64xf32>
    %4 = arith.mulf %1, %3 : vector<16x64xf32>
    %c1 = arith.constant 1 : index
    %c0_5 = arith.constant 0 : index
    %c0_6 = arith.constant 0 : index
    %5 = vector.load %arg1[%c1, %c0_5, %c0_6] : memref<9x16x64xf32, #tpu.memory_space<vmem>>, vector<1x16x64xf32>
    %6 = vector.shape_cast %5 : vector<1x16x64xf32> to vector<16x64xf32>
    %c1_7 = arith.constant 1 : index
    %c0_8 = arith.constant 0 : index
    %c0_9 = arith.constant 0 : index
    %7 = vector.load %arg2[%c1_7, %c0_8, %c0_9] : memref<9x16x64xf32, #tpu.memory_space<vmem>>, vector<1x16x64xf32>
    %8 = vector.shape_cast %7 : vector<1x16x64xf32> to vector<16x64xf32>
    %9 = arith.mulf %6, %8 : vector<16x64xf32>
    %10 = arith.addf %4, %9 : vector<16x64xf32>
    %c2 = arith.constant 2 : index
    %c0_10 = arith.constant 0 : index
    %c0_11 = arith.constant 0 : index
    %11 = vector.load %arg1[%c2, %c0_10, %c0_11] : memref<9x16x64xf32, #tpu.memory_space<vmem>>, vector<1x16x64xf32>
    %12 = vector.shape_cast %11 : vector<1x16x64xf32> to vector<16x64xf32>
    %c2_12 = arith.constant 2 : index
    %c0_13 = arith.constant 0 : index
    %c0_14 = arith.constant 0 : index
    %13 = vector.load %arg2[%c2_12, %c0_13, %c0_14] : memref<9x16x64xf32, #tpu.memory_space<vmem>>, vector<1x16x64xf32>
    %14 = vector.shape_cast %13 : vector<1x16x64xf32> to vector<16x64xf32>
    %15 = arith.mulf %12, %14 : vector<16x64xf32>
    %16 = arith.addf %10, %15 : vector<16x64xf32>
    %c3 = arith.constant 3 : index
    %c0_15 = arith.constant 0 : index
    %c0_16 = arith.constant 0 : index
    %17 = vector.load %arg1[%c3, %c0_15, %c0_16] : memref<9x16x64xf32, #tpu.memory_space<vmem>>, vector<1x16x64xf32>
    %18 = vector.shape_cast %17 : vector<1x16x64xf32> to vector<16x64xf32>
    %c3_17 = arith.constant 3 : index
    %c0_18 = arith.constant 0 : index
    %c0_19 = arith.constant 0 : index
    %19 = vector.load %arg2[%c3_17, %c0_18, %c0_19] : memref<9x16x64xf32, #tpu.memory_space<vmem>>, vector<1x16x64xf32>
    %20 = vector.shape_cast %19 : vector<1x16x64xf32> to vector<16x64xf32>
    %21 = arith.mulf %18, %20 : vector<16x64xf32>
    %22 = arith.addf %16, %21 : vector<16x64xf32>
    %c4 = arith.constant 4 : index
    %c0_20 = arith.constant 0 : index
    %c0_21 = arith.constant 0 : index
    %23 = vector.load %arg1[%c4, %c0_20, %c0_21] : memref<9x16x64xf32, #tpu.memory_space<vmem>>, vector<1x16x64xf32>
    %24 = vector.shape_cast %23 : vector<1x16x64xf32> to vector<16x64xf32>
    %c4_22 = arith.constant 4 : index
    %c0_23 = arith.constant 0 : index
    %c0_24 = arith.constant 0 : index
    %25 = vector.load %arg2[%c4_22, %c0_23, %c0_24] : memref<9x16x64xf32, #tpu.memory_space<vmem>>, vector<1x16x64xf32>
    %26 = vector.shape_cast %25 : vector<1x16x64xf32> to vector<16x64xf32>
    %27 = arith.mulf %24, %26 : vector<16x64xf32>
    %28 = arith.addf %22, %27 : vector<16x64xf32>
    %c5 = arith.constant 5 : index
    %c0_25 = arith.constant 0 : index
    %c0_26 = arith.constant 0 : index
    %29 = vector.load %arg1[%c5, %c0_25, %c0_26] : memref<9x16x64xf32, #tpu.memory_space<vmem>>, vector<1x16x64xf32>
    %30 = vector.shape_cast %29 : vector<1x16x64xf32> to vector<16x64xf32>
    %c5_27 = arith.constant 5 : index
    %c0_28 = arith.constant 0 : index
    %c0_29 = arith.constant 0 : index
    %31 = vector.load %arg2[%c5_27, %c0_28, %c0_29] : memref<9x16x64xf32, #tpu.memory_space<vmem>>, vector<1x16x64xf32>
    %32 = vector.shape_cast %31 : vector<1x16x64xf32> to vector<16x64xf32>
    %33 = arith.mulf %30, %32 : vector<16x64xf32>
    %34 = arith.addf %28, %33 : vector<16x64xf32>
    %c6 = arith.constant 6 : index
    %c0_30 = arith.constant 0 : index
    %c0_31 = arith.constant 0 : index
    %35 = vector.load %arg1[%c6, %c0_30, %c0_31] : memref<9x16x64xf32, #tpu.memory_space<vmem>>, vector<1x16x64xf32>
    %36 = vector.shape_cast %35 : vector<1x16x64xf32> to vector<16x64xf32>
    %c6_32 = arith.constant 6 : index
    %c0_33 = arith.constant 0 : index
    %c0_34 = arith.constant 0 : index
    %37 = vector.load %arg2[%c6_32, %c0_33, %c0_34] : memref<9x16x64xf32, #tpu.memory_space<vmem>>, vector<1x16x64xf32>
    %38 = vector.shape_cast %37 : vector<1x16x64xf32> to vector<16x64xf32>
    %39 = arith.mulf %36, %38 : vector<16x64xf32>
    %40 = arith.addf %34, %39 : vector<16x64xf32>
    %c7 = arith.constant 7 : index
    %c0_35 = arith.constant 0 : index
    %c0_36 = arith.constant 0 : index
    %41 = vector.load %arg1[%c7, %c0_35, %c0_36] : memref<9x16x64xf32, #tpu.memory_space<vmem>>, vector<1x16x64xf32>
    %42 = vector.shape_cast %41 : vector<1x16x64xf32> to vector<16x64xf32>
    %c7_37 = arith.constant 7 : index
    %c0_38 = arith.constant 0 : index
    %c0_39 = arith.constant 0 : index
    %43 = vector.load %arg2[%c7_37, %c0_38, %c0_39] : memref<9x16x64xf32, #tpu.memory_space<vmem>>, vector<1x16x64xf32>
    %44 = vector.shape_cast %43 : vector<1x16x64xf32> to vector<16x64xf32>
    %45 = arith.mulf %42, %44 : vector<16x64xf32>
    %46 = arith.addf %40, %45 : vector<16x64xf32>
    %c8 = arith.constant 8 : index
    %c0_40 = arith.constant 0 : index
    %c0_41 = arith.constant 0 : index
    %47 = vector.load %arg1[%c8, %c0_40, %c0_41] : memref<9x16x64xf32, #tpu.memory_space<vmem>>, vector<1x16x64xf32>
    %48 = vector.shape_cast %47 : vector<1x16x64xf32> to vector<16x64xf32>
    %c8_42 = arith.constant 8 : index
    %c0_43 = arith.constant 0 : index
    %c0_44 = arith.constant 0 : index
    %49 = vector.load %arg2[%c8_42, %c0_43, %c0_44] : memref<9x16x64xf32, #tpu.memory_space<vmem>>, vector<1x16x64xf32>
    %50 = vector.shape_cast %49 : vector<1x16x64xf32> to vector<16x64xf32>
    %51 = arith.mulf %48, %50 : vector<16x64xf32>
    %52 = arith.addf %46, %51 : vector<16x64xf32>
    %c0_45 = arith.constant 0 : index
    %c0_46 = arith.constant 0 : index
    %53 = vector.load %arg3[%c0_45, %c0_46] : memref<16x64xf32, #tpu.memory_space<vmem>>, vector<16x64xf32>
    %54 = arith.addf %52, %53 : vector<16x64xf32>
    %cst = arith.constant 0.000000e+00 : f32
    %55 = vector.broadcast %cst : f32 to vector<16x64xf32>
    %56 = arith.maximumf %54, %55 : vector<16x64xf32>
    %c0_47 = arith.constant 0 : index
    %c0_48 = arith.constant 0 : index
    %57 = vector.load %arg4[%c0_47, %c0_48] : memref<64x128xf32, #tpu.memory_space<vmem>>, vector<64x128xf32>
    %cst_49 = arith.constant dense<0.000000e+00> : vector<16x128xf32>
    %58 = tpu.matmul %56, %57, %cst_49 {dimension_numbers = #tpu.dot_dimension_numbers<[1], [0], [0], [1], [0, 0, 1, 1], [], []>} : vector<16x64xf32>, vector<64x128xf32>, vector<16x128xf32> -> vector<16x128xf32>
    %c0_50 = arith.constant 0 : index
    %c0_51 = arith.constant 0 : index
    %59 = vector.load %arg5[%c0_50, %c0_51] : memref<1x128xf32, #tpu.memory_space<vmem>>, vector<1x128xf32>
    %60 = vector.broadcast %59 : vector<1x128xf32> to vector<16x128xf32>
    %61 = arith.addf %58, %60 : vector<16x128xf32>
    %cst_52 = arith.constant 0.000000e+00 : f32
    %62 = vector.broadcast %cst_52 : f32 to vector<16x128xf32>
    %63 = arith.maximumf %61, %62 : vector<16x128xf32>
    %c0_53 = arith.constant 0 : index
    %c0_54 = arith.constant 0 : index
    %64 = vector.load %arg6[%c0_53, %c0_54] : memref<16x128xf32, #tpu.memory_space<vmem>>, vector<16x128xf32>
    tpu.vector_store %arg6[%c0_53, %c0_54], %63 {strides = array<i32>} : memref<16x128xf32, #tpu.memory_space<vmem>>, vector<16x128xf32>,
    return
  }
  func.func @transform_0(%arg0: i32) -> (i32, i32, i32) {
    %c0_i32 = arith.constant 0 : i32
    %c0_i32_0 = arith.constant 0 : i32
    %c0_i32_1 = arith.constant 0 : i32
    return %c0_i32, %arg0, %c0_i32_0 : i32, i32, i32
  }
  func.func @transform_1(%arg0: i32) -> (i32, i32, i32) {
    %c0_i32 = arith.constant 0 : i32
    %c0_i32_0 = arith.constant 0 : i32
    %c0_i32_1 = arith.constant 0 : i32
    %c0_i32_2 = arith.constant 0 : i32
    return %c0_i32, %c0_i32_0, %c0_i32_1 : i32, i32, i32
  }
  func.func @transform_2(%arg0: i32) -> (i32, i32) {
    %c0_i32 = arith.constant 0 : i32
    %c0_i32_0 = arith.constant 0 : i32
    %c0_i32_1 = arith.constant 0 : i32
    return %c0_i32, %c0_i32_0 : i32, i32
  }
  func.func @transform_3(%arg0: i32) -> (i32, i32) {
    %c0_i32 = arith.constant 0 : i32
    %c0_i32_0 = arith.constant 0 : i32
    %c0_i32_1 = arith.constant 0 : i32
    return %c0_i32, %c0_i32_0 : i32, i32
  }
  func.func @transform_4(%arg0: i32) -> (i32, i32) {
    %c0_i32 = arith.constant 0 : i32
    %c0_i32_0 = arith.constant 0 : i32
    %c0_i32_1 = arith.constant 0 : i32
    return %c0_i32, %c0_i32_0 : i32, i32
  }
  func.func @transform_5(%arg0: i32) -> (i32, i32) {
    %c0_i32 = arith.constant 0 : i32
    %c0_i32_0 = arith.constant 0 : i32
    return %arg0, %c0_i32 : i32, i32
  }
}

</mosaic_0001>

<bundles_post_ra>
// kernel: tpu_custom_call.1
= control target key start
LH: loop header
LB: loop body
LE: loop exit
PB: predicated region body
PF: predicated region fallthrough
CT: control target
= control target key end

     0   :  { %10 = vsyncpa [#allocation3], 0  ;;  %s1114_s0 = inlined_call_operand.hbm [shape: f32[9,32,64], index: 0, kind: input, shape index: {}]   ;;  %s1115_s1 = inlined_call_operand.hbm [shape: f32[9,16,64], index: 1, kind: input, shape index: {}]   ;;  %s1116_s2 = inlined_call_operand.hbm [shape: f32[16,64], index: 2, kind: input, shape index: {}]   ;;  %s1117_s3 = inlined_call_operand.hbm [shape: f32[64,128], index: 3, kind: input, shape index: {}]   ;;  %s1118_s4 = inlined_call_operand.vmem [shape: f32[1,128], index: 4, kind: input, shape index: {}]   ;;  %s1119_s5 = inlined_call_operand.hbm [shape: f32[32,128], index: 5, kind: output, shape index: {}]  }
   0x1   :  { %12 = vsyncpa [#allocation3 + $0x1], 0 }
   0x2   :  { %13 = vsyncpa [#allocation6], 0 }
   0x3   :  { %14 = vsyncpa [#allocation9], 0 }
   0x4   :  { %15 = vsyncpa [#allocation4], 0 }
   0x5   :  { %17 = vsyncpa [#allocation4 + $0x1], 0  ;;  %s927_s18 = smov 0   ;;  %s929_s19 = smov 0  }
   0x6   :  { %s931_s20 = smov 0   ;;  %s933_s21 = smov 0  }
   0x7 LB: > { %s948_s22 = sadd.s32 4294967295, %s882_s21   ;;  %s578_s23 = sadd.s32 4294967294, %s882_s21   ;;  %s882_s21 = sphi %s933_s21, %s1129_s21   ;;  %s878_s20 = sphi %s931_s20, %s1128_s20   ;;  %s874_s19 = sphi %s929_s19, %s1127_s19   ;;  %s870_s18 = sphi %s927_s18, %s1126_s18  }
   0x8   : > { %s952_s24 = sadd.s32 1, %s882_s21   ;;  %s30_s25 = sadd.s32 1, %s878_s20 }
   0x9   : > { %s27_s26 = ssub.s32 %s882_s21, %s952_s24  ;;  %p37_p0 = scmp.ne.s32.totalorder %s878_s20, %s874_s19 }
   0xa   : > { %p28_p1 = scmp.eq.s32.totalorder %s27_s26, 0  ;;  %p38_p2 = scmp.eq.s32.totalorder %s882_s21, 0 }
   0xb   : > { %p43_p3 = scmp.ne.s32.totalorder %s874_s19, %s870_s18  ;;  %p44_p4 = scmp.eq.s32.totalorder %s948_s22, 0 }
   0xc   : > { %s964_s27 = scalar_select %p28_p1, %s878_s20, %s30_s25  }
   0xd   : > { %p966_p5 = por %p38_p2, %p37_p0  ;;  %p972_p6 = por %p44_p4, %p43_p3 }
   0xe   : > { %p151_p7 = scmp.eq.s32.totalorder %s948_s22, 1  ;;  %p157_p8 = scmp.eq.s32.totalorder %s578_s23, 1 }
   0xf   : > { %p579_p9 = scmp.ge.s32.totalorder %s882_s21, 1  ;;  %p164_p10 = scmp.lt.s32.totalorder %s882_s21, 3 }
  0x10   : > { %p979_p11 = por %p151_p7, %p37_p0  ;;  %p983_p12 = por %p157_p8, %p43_p3 }
  0x11   : > { %p987_p13 = pnand %p579_p9, %p164_p10  ;;  %s175_s10 = sshll.u32 %s1115_s1, 4  ;;  %s176_s10 = int_to_ptr.hbm [resolvable:$true] %s175_s10 }
  0x12   : > { %s884_s11 = smov [#allocation5]   ;;  %s189_s16 = sshll.u32 %s1116_s2, 4  ;;  %s190_s16 = int_to_ptr.hbm [resolvable:$true] %s189_s16 }
  0x13   : > { %p651_p1 = pneg %p987_p13  ;;  %s177_s12 = sshll.u32 %s884_s11, 4  ;;  %s178_s12 = int_to_ptr.vmem [resolvable:$true] %s177_s12 }
  0x14   : > { %s885_s17 = smov 128   ;;  %s886_s23 = smov 8  }
  0x15   : > { %p998_p0 = pnand %p651_p1, %p44_p4  ;;  %s203_s8 = sshll.u32 %s1117_s3, 4  ;;  %s204_s8 = int_to_ptr.hbm [resolvable:$true] %s203_s8 }
  0x16   : > { %s887_s9 = smov [#allocation7]   ;;  %s888_s14 = smov [#allocation8]  }
  0x17   : > { %654 = dma.hbm_to_vmem [thread:$0]  (!%p998_p0), %s176_s10, 2304, %s178_s12, [#allocation6], %s885_s17, %s885_s17, %s886_s23  }
  0x18   : > { %s191_s11 = sshll.u32 %s887_s9, 4  ;;  %s205_s15 = sshll.u32 %s888_s14, 4  ;;  %s192_s11 = int_to_ptr.vmem [resolvable:$true] %s191_s11  ;;  %s206_s15 = int_to_ptr.vmem [resolvable:$true] %s205_s15 }
  0x19   : > { %657 = dma.hbm_to_vmem [thread:$0]  (!%p998_p0), %s190_s16, 256, %s192_s11, [#allocation6], %s885_s17, %s885_s17, %s886_s23  }
  0x1a   : > { %660 = dma.hbm_to_vmem [thread:$0]  (!%p998_p0), %s204_s8, 1024, %s206_s15, [#allocation9], %s885_s17, %s885_s17, %s886_s23  }
  0x1b   : > { %p583_p2 = scmp.ge.s32.totalorder %s882_s21, 2 }
  0x1d   : > { %218 = sbr.rel (%p583_p2) target bundleno = 48 (0x30), region = 32 }
  0x22   : > { %s222_s10 = sand.u32 1, %s878_s20   ;;  %s616_s12 = sshll.u32 %s882_s21, 4 }
  0x23   : > { %s626_s25 = smul.u32 144, %s222_s10  ;;  %s231_s13 = scalar_lea.hbm %s1114_s0, %s616_s12 }
  0x24   : > { %s244_s17 = sshll.u32 %s231_s13, 4  ;;  %s889_s14 = smov 512   ;;  %s245_s17 = int_to_ptr.hbm [resolvable:$true] %s244_s17 }
  0x25   : > { %s634_s23 = scalar_select %p966_p5, [#allocation0], [#allocation13] }
  0x26   : > { %s226_s8 = scalar_lea.vmem [#allocation2], %s626_s25  ;;  %635 = sst [smem:[#allocation12]] (%p966_p5), %s889_s14 }
  0x27   : > { %s246_s9 = sshll.u32 %s226_s8, 4  ;;  %s236_s11 = sld [smem:[%s634_s23]]   ;;  %s247_s9 = int_to_ptr.vmem [resolvable:$true] %s246_s9 }
  0x28   : > { %s890_s15 = smov 256   ;;  %s891_s16 = smov 2  }
  0x29   : > { %636 = sst [smem:[#allocation12 + $0x1]] (%p966_p5), %s890_s15  ;;  %s892_s12 = smov 128  }
  0x2a   : > { %637 = sst [smem:[#allocation12 + $0x2]] (%p966_p5), %s891_s16  ;;  %s893_s25 = smov 8  }
  0x2b   : > { %638 = sst [smem:[#allocation12 + $0x3]] (%p966_p5), %s892_s12  ;;  %s223_s23 = scalar_lea.sflag [#allocation3], %s222_s10 }
  0x2c   : > { %639 = sst [smem:[#allocation12 + $0x4]] (%p966_p5), %s892_s12  ;;  %s894_s8 = smov [#allocation11]  }
  0x2d   : > { %s586_s26 = sshll.u32 %s236_s11, 26  ;;  %640 = sst [smem:[#allocation12 + $0x5]] (%p966_p5), %s893_s25 }
  0x2e   : > { %s587_s13 = sadd.s32 134217728, %s586_s26 }
  0x2f   : > { %641 = dma.general (%p966_p5), %s245_s17, 2304, %s247_s9, %s223_s23, %s894_s8, [#allocation12], %s587_s13, 0  }
  0x30 PF: > { %271 = sbr.rel (%p987_p13) target bundleno = 222 (0xde), region = 40  ;;  %s1041_s14 = sand.u32 (!%p987_p13), 1, %s874_s19  }
  0x31   : > { %s627_s15 = smul.u32 (!%p987_p13), 144, %s1041_s14  ;;  %s274_s11 = scalar_lea.sflag (!%p987_p13), [#allocation3], %s1041_s14 }
  0x33   : > { %s1045_s16 = scalar_lea.vmem (!%p987_p13), [#allocation2], %s627_s15 }
  0x35   : > { %853 = dma.done.wait (%p972_p6), %s274_s11, 2304  }
  0x36   : > { %855 = vsyncadd (%p972_p6), %s274_s11, 4294964992 }
  0x37   : > { %857 = dma.done.wait (%p44_p4), [#allocation6], 2560  }
  0x38   : > { %859 = vsyncadd (%p44_p4), [#allocation6], 4294964736 }
  0x39   : > { %861 = dma.done.wait (%p44_p4), [#allocation9], 1024  }
  0x3a   : > { %863 = vsyncadd (%p44_p4), [#allocation9], 4294966272  ;;  %v421_v0 = vld [vmem:[#allocation8 + $0x38] sm:$0xff]  ;;  %v420_v1 = vld [vmem:[#allocation8 + $0x30] sm:$0xff]  ;;  %vm426_vm0 = vcmask 523264   ;;  %s592_s7 = sshll.u32 %s1041_s14, 4 }
  0x3b   : > { %441 = vmatpush.msra.mxu0 %v421_v0  ;;  %618 = vmatpush.msra.mxu1 %v421_v0  ;;  %v419_v2 = vld [vmem:[#allocation8 + $0x28] sm:$0xff]  ;;  %v418_v3 = vld [vmem:[#allocation8 + $0x20] sm:$0xff]  ;;  %v332_v7 = vld [vmem:[#allocation5 + $0x10] sm:$0xff]  ;;  %s617_s10 = sshll.u32 %s948_s22, 4  ;;  %s319_s26 = scalar_lea.vmem [#allocation10], %s592_s7 }
  0x3c   : > { %v322_v4 = vld [vmem:[%s1045_s16] sm:$0xff]  ;;  %v593_v6 = vld [vmem:[%s1045_s16 + $0x10] sm:$0xff]  ;;  %v417_v17 = vld [vmem:[#allocation8 + $0x18] sm:$0xff]  ;;  %s472_s12 = scalar_lea.hbm %s1119_s5, %s617_s10  ;;  %s473_s25 = sshll.u32 %s319_s26, 4  ;;  %s474_s25 = int_to_ptr.vmem [resolvable:$true] %s473_s25 }
  0x3d   : > { %442 = vmatpush.msra.mxu0 %v420_v1  ;;  %619 = vmatpush.msra.mxu1 %v420_v1  ;;  %v324_v5 = vld [vmem:[#allocation5] sm:$0xff]  ;;  %v334_v9 = vmul.f32 %v593_v6, %v332_v7  ;;  %v352_v14 = vld [vmem:[#allocation5 + $0x30] sm:$0xff]  ;;  %v415_v23 = vld [vmem:[#allocation8 + $0x8] sm:$0xff]  ;;  %s475_s13 = sshll.u32 %s472_s12, 4  ;;  %s461_s23 = scalar_lea.sflag [#allocation4], %s1041_s14  ;;  %s476_s13 = int_to_ptr.hbm [resolvable:$true] %s475_s13 }
  0x3e   : > { %v326_v8 = vmul.f32 %v324_v5, %v322_v4  ;;  %v595_v10 = vld [vmem:[%s1045_s16 + $0x20] sm:$0xff]  ;;  %v597_v12 = vld [vmem:[%s1045_s16 + $0x30] sm:$0xff]  ;;  %v323_v29 = vld [vmem:[%s1045_s16 + $0x8] sm:$0xff]  ;;  %s822_s8 = sshra.s32 %s476_s13, 4  ;;  %s823_s8 = int_to_ptr.hbm [resolvable:$true] %s822_s8 }
  0x3f   : > { %v342_v11 = vld [vmem:[#allocation5 + $0x20] sm:$0xff]  ;;  %443 = vmatpush.msra.mxu0 %v419_v2  ;;  %620 = vmatpush.msra.mxu1 %v419_v2  ;;  %v354_v19 = vmul.f32 %v597_v12, %v352_v14  ;;  %v416_v20 = vld [vmem:[#allocation8 + $0x10] sm:$0xff]  ;;  %v325_v30 = vld [vmem:[#allocation5 + $0x8] sm:$0xff]  ;;  %s824_s22 = scalar_lea.hbm %s823_s8, 16  ;;  %p829_p6 = scmp.lt.s32.totalorder %s823_s8, %s1119_s5 }
  0x40   : > { %v344_v13 = vmul.f32 %v595_v10, %v342_v11  ;;  %v599_v15 = vld [vmem:[%s1045_s16 + $0x40] sm:$0xff]  ;;  %v336_v18 = vadd.f32 %v334_v9, %v326_v8  ;;  %v601_v21 = vld [vmem:[%s1045_s16 + $0x50] sm:$0xff]  ;;  %v594_v31 = vld [vmem:[%s1045_s16 + $0x18] sm:$0xff]  ;;  %v327_v34 = vmul.f32 %v325_v30, %v323_v29  ;;  %p825_p3 = scmp.ne.s32.totalorder %s823_s8, %s824_s22 }
  0x41   : > { %v362_v16 = vld [vmem:[#allocation5 + $0x40] sm:$0xff]  ;;  %444 = vmatpush.msra.mxu0 %v418_v3  ;;  %621 = vmatpush.msra.mxu1 %v418_v3  ;;  %v372_v22 = vld [vmem:[#allocation5 + $0x50] sm:$0xff]  ;;  %v333_v35 = vld [vmem:[#allocation5 + $0x18] sm:$0xff] }
  0x42   : > { %v346_v24 = vadd.f32 %v344_v13, %v336_v18  ;;  %v364_v25 = vmul.f32 %v599_v15, %v362_v16  ;;  %v603_v26 = vld [vmem:[%s1045_s16 + $0x60] sm:$0xff]  ;;  %v605_v28 = vld [vmem:[%s1045_s16 + $0x70] sm:$0xff]  ;;  %v374_v33 = vmul.f32 %v601_v21, %v372_v22  ;;  %v596_v36 = vld [vmem:[%s1045_s16 + $0x28] sm:$0xff]  ;;  %v335_v39 = vmul.f32 %v594_v31, %v333_v35  ;;  %p826_p4 = pnand %p825_p3, %p979_p11 }
  0x43   : > { %v382_v27 = vld [vmem:[#allocation5 + $0x60] sm:$0xff]  ;;  %445 = vmatpush.msra.mxu0 %v417_v17  ;;  %622 = vmatpush.msra.mxu1 %v417_v17  ;;  %v343_v37 = vld [vmem:[#allocation5 + $0x28] sm:$0xff]  ;;  %v392_v38 = vld [vmem:[#allocation5 + $0x70] sm:$0xff] }
  0x44   : > { %v356_v32 = vadd.f32 %v354_v19, %v346_v24  ;;  %v345_v40 = vmul.f32 %v596_v36, %v343_v37  ;;  %v598_v41 = vld [vmem:[%s1045_s16 + $0x38] sm:$0xff]  ;;  %v414_v43 = vld [vmem:[#allocation8] sm:$0xff]  ;;  %v384_v45 = vmul.f32 %v603_v26, %v382_v27  ;;  %v600_v46 = vld [vmem:[%s1045_s16 + $0x48] sm:$0xff]  ;;  %v337_v50 = vadd.f32 %v335_v39, %v327_v34  ;;  %p827_p5 = pneg %p826_p4 }
  0x45   : > { %446 = vmatpush.msra.mxu0 %v416_v20  ;;  %623 = vmatpush.msra.mxu1 %v416_v20  ;;  %v353_v42 = vld [vmem:[#allocation5 + $0x38] sm:$0xff]  ;;  %v363_v47 = vld [vmem:[#allocation5 + $0x48] sm:$0xff]  ;;  %v607_v48 = vld [vmem:[%s1045_s16 + $0x80] sm:$0xff]  ;;  %v394_v53 = vmul.f32 %v605_v28, %v392_v38 }
  0x46   : > { %v366_v44 = vadd.f32 %v364_v25, %v356_v32  ;;  %v402_v49 = vld [vmem:[#allocation5 + $0x80] sm:$0xff]  ;;  %v355_v51 = vmul.f32 %v598_v41, %v353_v42  ;;  %v602_v54 = vld [vmem:[%s1045_s16 + $0x58] sm:$0xff]  ;;  %v347_v56 = vadd.f32 %v345_v40, %v337_v50  ;;  %v365_v57 = vmul.f32 %v600_v46, %v363_v47  ;;  %v604_v60 = vld [vmem:[%s1045_s16 + $0x68] sm:$0xff] }
  0x47   : > { %447 = vmatpush.msra.mxu0 %v415_v23  ;;  %624 = vmatpush.msra.mxu1 %v415_v23  ;;  %v373_v55 = vld [vmem:[#allocation5 + $0x58] sm:$0xff]  ;;  %v404_v59 = vmul.f32 %v607_v48, %v402_v49  ;;  %v383_v61 = vld [vmem:[#allocation5 + $0x68] sm:$0xff]  ;;  %v408_v3 = vld [vmem:[#allocation7] sm:$0xff] }
  0x48   : > { %v376_v52 = vadd.f32 %v374_v33, %v366_v44  ;;  %v357_v62 = vadd.f32 %v355_v51, %v347_v56  ;;  %v375_v63 = vmul.f32 %v602_v54, %v373_v55  ;;  %v606_v1 = vld [vmem:[%s1045_s16 + $0x78] sm:$0xff]  ;;  %v385_v5 = vmul.f32 %v604_v60, %v383_v61  ;;  %v608_v7 = vld [vmem:[%s1045_s16 + $0x88] sm:$0xff]  ;;  %v717_v20 = vld [vmem:[%s1118_s4] ss:$0 sm:$0xff]  ;;  %s828_s16 = scalar_lea.hbm %s1119_s5, 32 }
  0x49   : > { %448 = vmatpush.msra.mxu0 %v414_v43  ;;  %625 = vmatpush.msra.mxu1 %v414_v43  ;;  %v393_v2 = vld [vmem:[#allocation5 + $0x78] sm:$0xff]  ;;  %v403_v8 = vld [vmem:[#allocation5 + $0x88] sm:$0xff]  ;;  %p830_p7 = scmp.lt.s32.totalorder %s828_s16, %s824_s22 }
  0x4a   : > { %v386_v58 = vadd.f32 %v384_v45, %v376_v52  ;;  %v367_v4 = vadd.f32 %v365_v57, %v357_v62  ;;  %v395_v10 = vmul.f32 %v606_v1, %v393_v2  ;;  %v405_v13 = vmul.f32 %v608_v7, %v403_v8  ;;  %v409_v16 = vld [vmem:[#allocation7 + $0x8] sm:$0xff] }
  0x4b   : > { %p831_p8 = por %p830_p7, %p829_p6 }
  0x4c   : > { %v396_v0 = vadd.f32 %v394_v53, %v386_v58  ;;  %v377_v9 = vadd.f32 %v375_v63, %v367_v4 }
  0x4d   : > { %p832_p9 = pnand %p831_p8, %p827_p5 }
  0x4e   : > { %v406_v6 = vadd.f32 %v404_v59, %v396_v0  ;;  %v387_v12 = vadd.f32 %v385_v5, %v377_v9 }
  0x50   : > { %v410_v11 = vadd.f32 %v408_v3, %v406_v6  ;;  %v397_v15 = vadd.f32 %v395_v10, %v387_v12 }
  0x52   : > { %v412_v14 = vmax.f32 %v410_v11, 0.0  ;;  %v407_v17 = vadd.f32 %v405_v13, %v397_v15 }
  0x54   : > { %609 = vmatmul.msk.f32.vlgmr.msra.gmra.mxu0 %vm426_vm0, %v412_v14  ;;  %v411_v18 = vadd.f32 %v409_v16, %v407_v17 }
  0x56   : > { %v413_v19 = vmax.f32 %v411_v18, 0.0 }
  0x58   : > { %610 = vmatmul.msk.f32.vlgmr.msra.gmra.mxu1 %vm426_vm0, %v413_v19 }
  0xd1   : > { %v450_v21 = vpop.f32.mrf.mxu0 }
  0xd2   : > { %v451_v22 = vadd.f32 %v717_v20, %v450_v21 }
  0xd4   : > { %v456_v23 = vmax.f32 %v451_v22, 0.0 }
  0xd5   : > { %v453_v24 = vpop.f32.mrf.mxu1 }
  0xd6   : > { %458 = vst [vmem:[%s319_s26] sm:$0xff] %v456_v23  ;;  %v454_v25 = vadd.f32 %v717_v20, %v453_v24 }
  0xd8   : > { %v457_v26 = vmax.f32 %v454_v25, 0.0 }
  0xda   : > { %459 = vst [vmem:[%s319_s26 + $0x8] sm:$0xff] %v457_v26 }
  0xdb   : > { %835 = shalt.err (!%p832_p9)
}
  0xdc   : > { %s895_s14 = smov 128   ;;  %s896_s7 = smov 8  }
  0xdd   : > { %649 = dma.vmem_to_hbm [thread:$0]  (%p979_p11), %s474_s25, 256, %s476_s13, %s461_s23, %s895_s14, %s895_s14, %s896_s7  }
  0xde PF: > { %s490_s10 = sand.u32 1, %s870_s18   ;;  %p662_p10 = pnand %p583_p2, %p983_p12 }
  0xdf   : > { %s491_s17 = scalar_lea.sflag [#allocation4], %s490_s10 }
  0xe0   : > { %p663_p13 = pneg %p662_p10 }
  0xe2   : > { %865 = dma.done.wait (%p663_p13), %s491_s17, 256  }
  0xe3   : > { %867 = vsyncadd (%p663_p13), %s491_s17, 4294967040  ;;  %p20_p1 = scmp.ge.s32.totalorder %s952_s24, 4   ;;  %s1126_s18 = smov %s874_s19 }
  0xe4   : > { %s1127_s19 = smov %s878_s20  ;;  %s1128_s20 = smov %s964_s27 }
  0xe5   : > { %s1129_s21 = smov %s952_s24  ;;  %22 = sbr.rel (!%p20_p1) target bundleno = 7 (0x7), region = 118 }
  0xea   :  { %497 = vsyncpa [#allocation3], 1 }
  0xeb   :  { %499 = vsyncpa [#allocation3 + $0x1], 1 }
  0xec   :  { %500 = vsyncpa [#allocation6], 1 }
  0xed   :  { %501 = vsyncpa [#allocation9], 1 }
  0xee   :  { %502 = vsyncpa [#allocation4], 1 }
  0xef   :  { %504 = vsyncpa [#allocation4 + $0x1], 1 }

</bundles_post_ra>
